<compile_context>
chip_gen: v5e
topology: v5e:2x2
jax: 0.10.0
libtpu: 0.0.40
codegen_flags: <defaults>
</compile_context>

<pallas_src>
import jax
import jax.numpy as jnp
from jax import lax
from jax.experimental import pallas as pl
from jax.experimental.pallas import tpu as pltpu

IN_F = 5
N1 = 40
N2 = 20
OUT_F = 1

TILE_B = 512


def mlp_kernel(x_ref, w1_ref, b1_ref, w2_ref, b2_ref, w3_ref, b3_ref, o_ref):
    # x_ref: [TILE_B, IN_F]  (natural batch-major layout straight from HBM)
    x = x_ref[...]

    # fc1 + tanh: contract the shared IN_F axis of w1 [N1, IN_F] and
    # x [TILE_B, IN_F] (NT matmul, i.e. w1 @ x^T) so the result lands
    # directly in batch-on-lanes layout [N1, TILE_B].            (MXU)
    h1 = lax.dot_general(
        w1_ref[...], x,
        dimension_numbers=(((1,), (1,)), ((), ())),
        preferred_element_type=jnp.float32,
    ) + b1_ref[...]
    h1 = jnp.tanh(h1)

    # fc2 + tanh: [N2, N1] @ [N1, TILE_B] -> [N2, TILE_B]         (MXU)
    h2 = jnp.dot(w2_ref[...], h1, preferred_element_type=jnp.float32) + b2_ref[...]
    h2 = jnp.tanh(h2)

    # fc3: K=20 contraction to a single output row -> VPU broadcast multiply
    # + sublane reduce (XLU) instead of a heavily padded 1-wide MXU dot.
    o = jnp.sum(w3_ref[...] * h2, axis=0, keepdims=True) + b3_ref[...]
    o_ref[...] = o.astype(o_ref.dtype)  # [1, TILE_B] lane-dense store


def mlp_forward(x, params, *, tile_b=TILE_B):
    """x: [B, 5] float32 -> [B, 1] float32."""
    w1, b1, w2, b2, w3, b3 = params
    B = x.shape[0]
    x = x.astype(jnp.float32)

    # Biases as columns (broadcast over the lane/batch axis in-kernel),
    # w3 as a [N2, 1] column.  Weights stay in PyTorch [out, in] layout.
    b1_c = b1.reshape(N1, 1)
    b2_c = b2.reshape(N2, 1)
    b3_c = b3.reshape(OUT_F, 1)
    w3_c = w3.reshape(OUT_F, N2).T                        # [N2, 1]

    # Pad batch up to a multiple of the tile so every grid step is full-size
    # (padded rows are sliced off after the call).
    num_tiles = pl.cdiv(B, tile_b)
    b_pad = num_tiles * tile_b
    if b_pad != B:
        x = jnp.pad(x, ((0, b_pad - B), (0, 0)))

    weight_bytes = (N1 * IN_F + N1 + N2 * N1 + N2 + N2 * OUT_F + OUT_F) * 4
    cost = pl.CostEstimate(
        flops=2 * b_pad * (IN_F * N1 + N1 * N2 + N2 * OUT_F),
        transcendentals=b_pad * (N1 + N2),
        bytes_accessed=b_pad * (IN_F + OUT_F) * 4 + weight_bytes,
    )

    out = pl.pallas_call(
        mlp_kernel,
        out_shape=jax.ShapeDtypeStruct((OUT_F, b_pad), jnp.float32),
        grid=(num_tiles,),
        in_specs=[
            pl.BlockSpec((tile_b, IN_F), lambda i: (i, 0)),   # x tile (pipelined)
            pl.BlockSpec((N1, IN_F), lambda i: (0, 0)),       # w1 (resident)
            pl.BlockSpec((N1, 1), lambda i: (0, 0)),          # b1
            pl.BlockSpec((N2, N1), lambda i: (0, 0)),         # w2
            pl.BlockSpec((N2, 1), lambda i: (0, 0)),          # b2
            pl.BlockSpec((N2, 1), lambda i: (0, 0)),          # w3 column
            pl.BlockSpec((OUT_F, 1), lambda i: (0, 0)),       # b3
        ],
        out_specs=pl.BlockSpec((OUT_F, tile_b), lambda i: (0, i)),
        compiler_params=pltpu.CompilerParams(
            dimension_semantics=("parallel",),
            vmem_limit_bytes=32 * 1024 * 1024,
        ),
        cost_estimate=cost,
    )(x, w1, b1_c, w2, b2_c, w3_c, b3_c)

    # [1, b_pad] -> [B, 1]  (contiguous row slice; no data movement)
    return out[0, :B].reshape(B, OUT_F)


def init_params(key):
    """Deterministic init mirroring nn.Linear default (uniform +-1/sqrt(fan_in))."""
    ks = jax.random.split(key, 6)

    def linear_init(kw, kb, fan_in, fan_out):
        bound = 1.0 / jnp.sqrt(fan_in)
        w = jax.random.uniform(kw, (fan_out, fan_in), jnp.float32, -bound, bound)
        b = jax.random.uniform(kb, (fan_out,), jnp.float32, -bound, bound)
        return w, b

    w1, b1 = linear_init(ks[0], ks[1], IN_F, N1)
    w2, b2 = linear_init(ks[2], ks[3], N1, N2)
    w3, b3 = linear_init(ks[4], ks[5], N2, OUT_F)
    return (w1, b1, w2, b2, w3, b3)


def mlp_reference(x, params):
    w1, b1, w2, b2, w3, b3 = params
    h = jnp.tanh(x @ w1.T + b1)
    h = jnp.tanh(h @ w2.T + b2)
    return h @ w3.T + b3


if __name__ == "__main__":
    key = jax.random.PRNGKey(0)
    k_x, k_p = jax.random.split(key)

    B = 8
    x = jax.random.normal(k_x, (B, IN_F), dtype=jnp.float32)
    params = init_params(k_p)

    out = mlp_forward(x, params)
    out = jax.block_until_ready(out)

    ref = mlp_reference(x, params)
    assert out.shape == (B, OUT_F), out.shape
    assert jnp.allclose(out, ref, atol=2e-5, rtol=1e-5), (
        f"max err {jnp.max(jnp.abs(out - ref))}"
    )

    print("KERNEL_OK")
</pallas_src>

<mosaic_0001>
module attributes {stable_mosaic.version = 11 : i64} {
  func.func @mlp_kernel(%arg0: i32, %arg1: memref<512x5xf32, #tpu.memory_space<vmem>>, %arg2: memref<40x5xf32, #tpu.memory_space<vmem>>, %arg3: memref<40x1xf32, #tpu.memory_space<vmem>>, %arg4: memref<20x40xf32, #tpu.memory_space<vmem>>, %arg5: memref<20x1xf32, #tpu.memory_space<vmem>>, %arg6: memref<20x1xf32, #tpu.memory_space<vmem>>, %arg7: memref<1x1xf32, #tpu.memory_space<vmem>>, %arg8: memref<1x512xf32, #tpu.memory_space<vmem>>) attributes {dimension_semantics = [#tpu.dimension_semantics<parallel>], iteration_bounds = array<i64: 1>, scalar_prefetch = 0 : i64, scratch_operands = 0 : i64, tpu.core_type = #tpu.core_type<tc>, window_params = [{transform_indices = @transform_0, window_bounds = array<i64: 512, 5>}, {pipeline_mode = #tpu.pipeline_mode<synchronous>, transform_indices = @transform_1, window_bounds = array<i64: 40, 5>}, {pipeline_mode = #tpu.pipeline_mode<synchronous>, transform_indices = @transform_2, window_bounds = array<i64: 40, 1>}, {pipeline_mode = #tpu.pipeline_mode<synchronous>, transform_indices = @transform_3, window_bounds = array<i64: 20, 40>}, {pipeline_mode = #tpu.pipeline_mode<synchronous>, transform_indices = @transform_4, window_bounds = array<i64: 20, 1>}, {pipeline_mode = #tpu.pipeline_mode<synchronous>, transform_indices = @transform_5, window_bounds = array<i64: 20, 1>}, {pipeline_mode = #tpu.pipeline_mode<synchronous>, transform_indices = @transform_6, window_bounds = array<i64: 1, 1>}, {transform_indices = @transform_7, window_bounds = array<i64: 1, 512>}]} {
    %c0 = arith.constant 0 : index
    %c0_0 = arith.constant 0 : index
    %0 = vector.load %arg1[%c0, %c0_0] : memref<512x5xf32, #tpu.memory_space<vmem>>, vector<512x5xf32>
    %c0_1 = arith.constant 0 : index
    %c0_2 = arith.constant 0 : index
    %1 = vector.load %arg2[%c0_1, %c0_2] : memref<40x5xf32, #tpu.memory_space<vmem>>, vector<40x5xf32>
    %cst = arith.constant dense<0.000000e+00> : vector<40x512xf32>
    %2 = tpu.matmul %1, %0, %cst {dimension_numbers = #tpu.dot_dimension_numbers<[1], [1], [0], [0], [0, 0, 1, 0], [], []>} : vector<40x5xf32>, vector<512x5xf32>, vector<40x512xf32> -> vector<40x512xf32>
    %c0_3 = arith.constant 0 : index
    %c0_4 = arith.constant 0 : index
    %3 = vector.load %arg3[%c0_3, %c0_4] : memref<40x1xf32, #tpu.memory_space<vmem>>, vector<40x1xf32>
    %4 = vector.broadcast %3 : vector<40x1xf32> to vector<40x512xf32>
    %5 = arith.addf %2, %4 : vector<40x512xf32>
    %6 = math.tanh %5 : vector<40x512xf32>
    %c0_5 = arith.constant 0 : index
    %c0_6 = arith.constant 0 : index
    %7 = vector.load %arg4[%c0_5, %c0_6] : memref<20x40xf32, #tpu.memory_space<vmem>>, vector<20x40xf32>
    %cst_7 = arith.constant dense<0.000000e+00> : vector<20x512xf32>
    %8 = tpu.matmul %7, %6, %cst_7 {dimension_numbers = #tpu.dot_dimension_numbers<[1], [0], [0], [1], [0, 0, 1, 1], [], []>} : vector<20x40xf32>, vector<40x512xf32>, vector<20x512xf32> -> vector<20x512xf32>
    %c0_8 = arith.constant 0 : index
    %c0_9 = arith.constant 0 : index
    %9 = vector.load %arg5[%c0_8, %c0_9] : memref<20x1xf32, #tpu.memory_space<vmem>>, vector<20x1xf32>
    %10 = vector.broadcast %9 : vector<20x1xf32> to vector<20x512xf32>
    %11 = arith.addf %8, %10 : vector<20x512xf32>
    %12 = math.tanh %11 : vector<20x512xf32>
    %c0_10 = arith.constant 0 : index
    %c0_11 = arith.constant 0 : index
    %13 = vector.load %arg6[%c0_10, %c0_11] : memref<20x1xf32, #tpu.memory_space<vmem>>, vector<20x1xf32>
    %14 = vector.broadcast %13 : vector<20x1xf32> to vector<20x512xf32>
    %15 = arith.mulf %14, %12 : vector<20x512xf32>
    %cst_12 = arith.constant dense<0.000000e+00> : vector<512xf32>
    %16 = vector.multi_reduction <add>, %15, %cst_12 [0] : vector<20x512xf32> to vector<512xf32>
    %17 = vector.shape_cast %16 : vector<512xf32> to vector<1x512xf32>
    %c0_13 = arith.constant 0 : index
    %c0_14 = arith.constant 0 : index
    %18 = vector.load %arg7[%c0_13, %c0_14] : memref<1x1xf32, #tpu.memory_space<vmem>>, vector<1x1xf32>
    %19 = vector.broadcast %18 : vector<1x1xf32> to vector<1x512xf32>
    %20 = arith.addf %17, %19 : vector<1x512xf32>
    %c0_15 = arith.constant 0 : index
    %c0_16 = arith.constant 0 : index
    %21 = vector.load %arg8[%c0_15, %c0_16] : memref<1x512xf32, #tpu.memory_space<vmem>>, vector<1x512xf32>
    tpu.vector_store %arg8[%c0_15, %c0_16], %20 {strides = array<i32>} : memref<1x512xf32, #tpu.memory_space<vmem>>, vector<1x512xf32>,
    return
  }
  func.func @transform_0(%arg0: i32) -> (i32, i32) {
    %c0_i32 = arith.constant 0 : i32
    %c0_i32_0 = arith.constant 0 : i32
    return %arg0, %c0_i32 : i32, i32
  }
  func.func @transform_1(%arg0: i32) -> (i32, i32) {
    %c0_i32 = arith.constant 0 : i32
    %c0_i32_0 = arith.constant 0 : i32
    %c0_i32_1 = arith.constant 0 : i32
    return %c0_i32, %c0_i32_0 : i32, i32
  }
  func.func @transform_2(%arg0: i32) -> (i32, i32) {
    %c0_i32 = arith.constant 0 : i32
    %c0_i32_0 = arith.constant 0 : i32
    %c0_i32_1 = arith.constant 0 : i32
    return %c0_i32, %c0_i32_0 : i32, i32
  }
  func.func @transform_3(%arg0: i32) -> (i32, i32) {
    %c0_i32 = arith.constant 0 : i32
    %c0_i32_0 = arith.constant 0 : i32
    %c0_i32_1 = arith.constant 0 : i32
    return %c0_i32, %c0_i32_0 : i32, i32
  }
  func.func @transform_4(%arg0: i32) -> (i32, i32) {
    %c0_i32 = arith.constant 0 : i32
    %c0_i32_0 = arith.constant 0 : i32
    %c0_i32_1 = arith.constant 0 : i32
    return %c0_i32, %c0_i32_0 : i32, i32
  }
  func.func @transform_5(%arg0: i32) -> (i32, i32) {
    %c0_i32 = arith.constant 0 : i32
    %c0_i32_0 = arith.constant 0 : i32
    %c0_i32_1 = arith.constant 0 : i32
    return %c0_i32, %c0_i32_0 : i32, i32
  }
  func.func @transform_6(%arg0: i32) -> (i32, i32) {
    %c0_i32 = arith.constant 0 : i32
    %c0_i32_0 = arith.constant 0 : i32
    %c0_i32_1 = arith.constant 0 : i32
    return %c0_i32, %c0_i32_0 : i32, i32
  }
  func.func @transform_7(%arg0: i32) -> (i32, i32) {
    %c0_i32 = arith.constant 0 : i32
    %c0_i32_0 = arith.constant 0 : i32
    return %c0_i32, %arg0 : i32, i32
  }
}

</mosaic_0001>

<bundles_post_ra>
// kernel: tpu_custom_call.1
= control target key start
LH: loop header
LB: loop body
LE: loop exit
PB: predicated region body
PF: predicated region fallthrough
CT: control target
= control target key end

     0   :  { %s1338_s0 = inlined_call_operand.vmem [shape: f32[512,5], index: 0, kind: input, shape index: {}]   ;;  %s1339_s1 = inlined_call_operand.vmem [shape: f32[40,5], index: 1, kind: input, shape index: {}]   ;;  %s1340_s2 = inlined_call_operand.vmem [shape: f32[40,1], index: 2, kind: input, shape index: {}]   ;;  %s1341_s3 = inlined_call_operand.vmem [shape: f32[20,40], index: 3, kind: input, shape index: {}]   ;;  %s1342_s4 = inlined_call_operand.vmem [shape: f32[20,1], index: 4, kind: input, shape index: {}]   ;;  %s1343_s5 = inlined_call_operand.vmem [shape: f32[20,1], index: 5, kind: input, shape index: {}]   ;;  %s1344_s6 = inlined_call_operand.<no memory space> [shape: f32[1,1], index: 6, kind: input, shape index: {}]   ;;  %s1345_s7 = inlined_call_operand.hbm [shape: f32[1,512], index: 7, kind: output, shape index: {}]  }
   0x1   :  { %v12_v0 = vstv %s1344_s6 }
   0x2   :  { %13 = vst [vmem:[#allocation2] sm:$0x1] %v12_v0 }
   0x3   :  { %v44_v1 = vld [vmem:[%s1338_s0 + $0x78] sm:$0xff]  ;;  %vm128_vm0 = vcmask 39936   ;;  %v43_v5 = vld [vmem:[%s1338_s0 + $0x70] sm:$0xff]  ;;  %v42_v9 = vld [vmem:[%s1338_s0 + $0x68] sm:$0xff] }
   0x4   :  { %v60_v2 = vld [vmem:[%s1338_s0 + $0xf8] sm:$0xff]  ;;  %744 = vmatpush.xpose.msk.msra.mxu0 %vm128_vm0, %v44_v1  ;;  %v59_v6 = vld [vmem:[%s1338_s0 + $0xf0] sm:$0xff]  ;;  %v58_v10 = vld [vmem:[%s1338_s0 + $0xe8] sm:$0xff] }
   0x5   :  { %v76_v3 = vld [vmem:[%s1338_s0 + $0x178] sm:$0xff]  ;;  %765 = vmatpush.xpose.msk.msra.mxu1 %vm128_vm0, %v60_v2  ;;  %v75_v7 = vld [vmem:[%s1338_s0 + $0x170] sm:$0xff]  ;;  %v74_v11 = vld [vmem:[%s1338_s0 + $0x168] sm:$0xff] }
   0x6   :  { %v92_v4 = vld [vmem:[%s1338_s0 + $0x1f8] sm:$0xff]  ;;  %786 = vmatpush.xpose.msk.msra.mxu2 %vm128_vm0, %v76_v3  ;;  %v91_v8 = vld [vmem:[%s1338_s0 + $0x1f0] sm:$0xff]  ;;  %v90_v12 = vld [vmem:[%s1338_s0 + $0x1e8] sm:$0xff] }
   0x7   :  { %807 = vmatpush.xpose.msk.msra.mxu3 %vm128_vm0, %v92_v4  ;;  %v41_v13 = vld [vmem:[%s1338_s0 + $0x60] sm:$0xff]  ;;  %v40_v17 = vld [vmem:[%s1338_s0 + $0x58] sm:$0xff] }
   0x8   :  { %745 = vmatpush.xpose.msk.msra.mxu0 %vm128_vm0, %v43_v5  ;;  %v57_v14 = vld [vmem:[%s1338_s0 + $0xe0] sm:$0xff]  ;;  %v56_v18 = vld [vmem:[%s1338_s0 + $0xd8] sm:$0xff] }
   0x9   :  { %766 = vmatpush.xpose.msk.msra.mxu1 %vm128_vm0, %v59_v6  ;;  %v73_v15 = vld [vmem:[%s1338_s0 + $0x160] sm:$0xff]  ;;  %v72_v19 = vld [vmem:[%s1338_s0 + $0x158] sm:$0xff] }
   0xa   :  { %787 = vmatpush.xpose.msk.msra.mxu2 %vm128_vm0, %v75_v7  ;;  %v89_v16 = vld [vmem:[%s1338_s0 + $0x1e0] sm:$0xff]  ;;  %v88_v20 = vld [vmem:[%s1338_s0 + $0x1d8] sm:$0xff] }
   0xb   :  { %808 = vmatpush.xpose.msk.msra.mxu3 %vm128_vm0, %v91_v8 }
   0xc   :  { %746 = vmatpush.xpose.msk.msra.mxu0 %vm128_vm0, %v42_v9 }
   0xd   :  { %767 = vmatpush.xpose.msk.msra.mxu1 %vm128_vm0, %v58_v10 }
   0xe   :  { %788 = vmatpush.xpose.msk.msra.mxu2 %vm128_vm0, %v74_v11 }
   0xf   :  { %809 = vmatpush.xpose.msk.msra.mxu3 %vm128_vm0, %v90_v12 }
  0x10   :  { %747 = vmatpush.xpose.msk.msra.mxu0 %vm128_vm0, %v41_v13 }
  0x11   :  { %768 = vmatpush.xpose.msk.msra.mxu1 %vm128_vm0, %v57_v14 }
  0x12   :  { %789 = vmatpush.xpose.msk.msra.mxu2 %vm128_vm0, %v73_v15 }
  0x13   :  { %810 = vmatpush.xpose.msk.msra.mxu3 %vm128_vm0, %v89_v16 }
  0x14   :  { %14 = vsyncpa [#allocation4], 0  ;;  %748 = vmatpush.xpose.msk.msra.mxu0 %vm128_vm0, %v40_v17  ;;  %v39_v21 = vld [vmem:[%s1338_s0 + $0x50] sm:$0xff]  ;;  %v38_v25 = vld [vmem:[%s1338_s0 + $0x48] sm:$0xff]  ;;  %v935_v49 = vmov 0   ;;  %vm505_vm1 = vcmask 326656  }
  0x15   :  { %769 = vmatpush.xpose.msk.msra.mxu1 %vm128_vm0, %v56_v18  ;;  %v55_v22 = vld [vmem:[%s1338_s0 + $0xd0] sm:$0xff]  ;;  %v54_v26 = vld [vmem:[%s1338_s0 + $0xc8] sm:$0xff]  ;;  %v37_v29 = vld [vmem:[%s1338_s0 + $0x40] sm:$0xff]  ;;  %843 = vset.pattern.permute.xlu1 %v935_v49  ;;  %vm662_vm2 = vcmask 1043456   ;;  %vm716_vm3 = vcmask 1040384   ;;  %vm718_vm4 = vcmask 1042434  }
  0x16   :  { %790 = vmatpush.xpose.msk.msra.mxu2 %vm128_vm0, %v72_v19  ;;  %v71_v23 = vld [vmem:[%s1338_s0 + $0x150] sm:$0xff]  ;;  %v70_v27 = vld [vmem:[%s1338_s0 + $0x148] sm:$0xff]  ;;  %v53_v30 = vld [vmem:[%s1338_s0 + $0xc0] sm:$0xff]  ;;  %842 = vset.pattern.permute.xlu0 %v935_v49  ;;  %s735_s21 = sshll.u32 %s1345_s7, 4  ;;  %vm720_vm5 = vcmask 1041408   ;;  %s736_s21 = int_to_ptr.hbm [resolvable:$true] %s735_s21 }
  0x17   :  { %811 = vmatpush.xpose.msk.msra.mxu3 %vm128_vm0, %v88_v20  ;;  %v87_v24 = vld [vmem:[%s1338_s0 + $0x1d0] sm:$0xff]  ;;  %v86_v28 = vld [vmem:[%s1338_s0 + $0x1c8] sm:$0xff]  ;;  %v69_v31 = vld [vmem:[%s1338_s0 + $0x140] sm:$0xff]  ;;  %844 = vset.pattern.permute.xlu2 %v935_v49 }
  0x18   :  { %749 = vmatpush.xpose.msk.msra.mxu0 %vm128_vm0, %v39_v21  ;;  %v85_v32 = vld [vmem:[%s1338_s0 + $0x1c0] sm:$0xff]  ;;  %v36_v33 = vld [vmem:[%s1338_s0 + $0x38] sm:$0xff]  ;;  %v35_v37 = vld [vmem:[%s1338_s0 + $0x30] sm:$0xff] }
  0x19   :  { %770 = vmatpush.xpose.msk.msra.mxu1 %vm128_vm0, %v55_v22  ;;  %v52_v34 = vld [vmem:[%s1338_s0 + $0xb8] sm:$0xff]  ;;  %v51_v38 = vld [vmem:[%s1338_s0 + $0xb0] sm:$0xff]  ;;  %v34_v41 = vld [vmem:[%s1338_s0 + $0x28] sm:$0xff] }
  0x1a   :  { %791 = vmatpush.xpose.msk.msra.mxu2 %vm128_vm0, %v71_v23  ;;  %v68_v35 = vld [vmem:[%s1338_s0 + $0x138] sm:$0xff]  ;;  %v67_v39 = vld [vmem:[%s1338_s0 + $0x130] sm:$0xff]  ;;  %v50_v42 = vld [vmem:[%s1338_s0 + $0xa8] sm:$0xff] }
  0x1b   :  { %812 = vmatpush.xpose.msk.msra.mxu3 %vm128_vm0, %v87_v24  ;;  %v84_v36 = vld [vmem:[%s1338_s0 + $0x1b8] sm:$0xff]  ;;  %v83_v40 = vld [vmem:[%s1338_s0 + $0x1b0] sm:$0xff]  ;;  %v66_v43 = vld [vmem:[%s1338_s0 + $0x128] sm:$0xff] }
  0x1c   :  { %750 = vmatpush.xpose.msk.msra.mxu0 %vm128_vm0, %v38_v25  ;;  %v82_v44 = vld [vmem:[%s1338_s0 + $0x1a8] sm:$0xff]  ;;  %v33_v45 = vld [vmem:[%s1338_s0 + $0x20] sm:$0xff]  ;;  %v32_v50 = vld [vmem:[%s1338_s0 + $0x18] sm:$0xff] }
  0x1d   :  { %771 = vmatpush.xpose.msk.msra.mxu1 %vm128_vm0, %v54_v26  ;;  %v49_v46 = vld [vmem:[%s1338_s0 + $0xa0] sm:$0xff]  ;;  %v48_v51 = vld [vmem:[%s1338_s0 + $0x98] sm:$0xff]  ;;  %v100_v54 = vld [vmem:[%s1340_s2 + $0x10] sm:$0xff] }
  0x1e   :  { %792 = vmatpush.xpose.msk.msra.mxu2 %vm128_vm0, %v70_v27  ;;  %v65_v47 = vld [vmem:[%s1338_s0 + $0x120] sm:$0xff]  ;;  %v64_v52 = vld [vmem:[%s1338_s0 + $0x118] sm:$0xff]  ;;  %v31_v55 = vld [vmem:[%s1338_s0 + $0x10] sm:$0xff]  ;;  %115 = vperm.xlu1 %843, %v100_v54  }
  0x1f   :  { %813 = vmatpush.xpose.msk.msra.mxu3 %vm128_vm0, %v86_v28  ;;  %v81_v48 = vld [vmem:[%s1338_s0 + $0x1a0] sm:$0xff]  ;;  %v80_v53 = vld [vmem:[%s1338_s0 + $0x198] sm:$0xff]  ;;  %v47_v56 = vld [vmem:[%s1338_s0 + $0x90] sm:$0xff] }
  0x20   :  { %751 = vmatpush.xpose.msk.msra.mxu0 %vm128_vm0, %v37_v29  ;;  %v63_v57 = vld [vmem:[%s1338_s0 + $0x110] sm:$0xff]  ;;  %v102_v59 = vld [vmem:[%s1340_s2 + $0x20] sm:$0xff]  ;;  %v30_v60 = vld [vmem:[%s1338_s0 + $0x8] sm:$0xff] }
  0x21   :  { %772 = vmatpush.xpose.msk.msra.mxu1 %vm128_vm0, %v53_v30  ;;  %v79_v58 = vld [vmem:[%s1338_s0 + $0x190] sm:$0xff]  ;;  %125 = vperm.xlu0 %842, %v102_v59   ;;  %v46_v61 = vld [vmem:[%s1338_s0 + $0x88] sm:$0xff]  ;;  %v29_v1 = vld [vmem:[%s1338_s0] sm:$0xff] }
  0x22   :  { %793 = vmatpush.xpose.msk.msra.mxu2 %vm128_vm0, %v69_v31  ;;  %v62_v62 = vld [vmem:[%s1338_s0 + $0x108] sm:$0xff]  ;;  %v45_v2 = vld [vmem:[%s1338_s0 + $0x80] sm:$0xff]  ;;  %v101_v5 = vld [vmem:[%s1340_s2 + $0x18] sm:$0xff] }
  0x23   :  { %814 = vmatpush.xpose.msk.msra.mxu3 %vm128_vm0, %v85_v32  ;;  %v78_v63 = vld [vmem:[%s1338_s0 + $0x188] sm:$0xff]  ;;  %v61_v3 = vld [vmem:[%s1338_s0 + $0x100] sm:$0xff]  ;;  %v489_v9 = vld [vmem:[%s1342_s4 + $0x10] sm:$0xf] }
  0x24   :  { %752 = vmatpush.xpose.msk.msra.mxu0 %vm128_vm0, %v36_v33  ;;  %v99_v0 = vld [vmem:[%s1340_s2 + $0x8] sm:$0xff]  ;;  %v77_v4 = vld [vmem:[%s1338_s0 + $0x180] sm:$0xff]  ;;  %v633_v12 = vld [vmem:[%s1343_s5 + $0x10] sm:$0xf] }
  0x25   :  { %773 = vmatpush.xpose.msk.msra.mxu1 %vm128_vm0, %v52_v34  ;;  %v93_v6 = vld [vmem:[%s1339_s1] sm:$0xff]  ;;  %v488_v7 = vld [vmem:[%s1342_s4 + $0x8] sm:$0xff]  ;;  %v95_v14 = vld [vmem:[%s1339_s1 + $0x10] sm:$0xff] }
  0x26   :  { %794 = vmatpush.xpose.msk.msra.mxu2 %vm128_vm0, %v68_v35  ;;  %110 = vperm.xlu1 %843, %v99_v0   ;;  %v98_v8 = vld [vmem:[%s1340_s2] sm:$0xff]  ;;  %v94_v10 = vld [vmem:[%s1339_s1 + $0x8] sm:$0xff]  ;;  %v96_v16 = vld [vmem:[%s1339_s1 + $0x18] sm:$0xff] }
  0x27   :  { %815 = vmatpush.xpose.msk.msra.mxu3 %vm128_vm0, %v84_v36  ;;  %105 = vperm.xlu2 %844, %v98_v8   ;;  %v487_v11 = vld [vmem:[%s1342_s4] sm:$0xff]  ;;  %v632_v13 = vld [vmem:[%s1343_s5 + $0x8] sm:$0xff] }
  0x28   :  { %753 = vmatpush.xpose.msk.msra.mxu0 %vm128_vm0, %v35_v37  ;;  %v631_v15 = vld [vmem:[%s1343_s5] sm:$0xff] }
  0x29   :  { %774 = vmatpush.xpose.msk.msra.mxu1 %vm128_vm0, %v51_v38  ;;  %120 = vperm.xlu0 %842, %v101_v5   ;;  %v698_v17 = vld [vmem:[#allocation2] sm:$0x1] }
  0x2a   :  { %795 = vmatpush.xpose.msk.msra.mxu2 %vm128_vm0, %v67_v39  ;;  %v97_v18 = vld [vmem:[%s1339_s1 + $0x20] sm:$0xff] }
  0x2b   :  { %816 = vmatpush.xpose.msk.msra.mxu3 %vm128_vm0, %v83_v40 }
  0x2c   :  { %754 = vmatpush.xpose.msk.msra.mxu0 %vm128_vm0, %v34_v41 }
  0x2d   :  { %775 = vmatpush.xpose.msk.msra.mxu1 %vm128_vm0, %v50_v42 }
  0x2e   :  { %796 = vmatpush.xpose.msk.msra.mxu2 %vm128_vm0, %v66_v43  ;;  %502 = vperm.xlu1 %843, %v489_v9  }
  0x2f   :  { %817 = vmatpush.xpose.msk.msra.mxu3 %vm128_vm0, %v82_v44  ;;  %492 = vperm.xlu2 %844, %v487_v11  }
  0x30   :  { %755 = vmatpush.xpose.msk.msra.mxu0 %vm128_vm0, %v33_v45 }
  0x31   :  { %776 = vmatpush.xpose.msk.msra.mxu1 %vm128_vm0, %v49_v46  ;;  %497 = vperm.xlu0 %842, %v488_v7  }
  0x32   :  { %797 = vmatpush.xpose.msk.msra.mxu2 %vm128_vm0, %v65_v47 }
  0x33   :  { %818 = vmatpush.xpose.msk.msra.mxu3 %vm128_vm0, %v81_v48 }
  0x34   :  { %756 = vmatpush.xpose.msk.msra.mxu0 %vm128_vm0, %v32_v50 }
  0x35   :  { %777 = vmatpush.xpose.msk.msra.mxu1 %vm128_vm0, %v48_v51 }
  0x36   :  { %798 = vmatpush.xpose.msk.msra.mxu2 %vm128_vm0, %v64_v52  ;;  %646 = vperm.xlu1 %843, %v633_v12  }
  0x37   :  { %819 = vmatpush.xpose.msk.msra.mxu3 %vm128_vm0, %v80_v53  ;;  %636 = vperm.xlu2 %844, %v631_v15  }
  0x38   :  { %757 = vmatpush.xpose.msk.msra.mxu0 %vm128_vm0, %v31_v55 }
  0x39   :  { %778 = vmatpush.xpose.msk.msra.mxu1 %vm128_vm0, %v47_v56  ;;  %641 = vperm.xlu0 %842, %v632_v13   ;;  %v484_v13 = vld [vmem:[%s1341_s3] sm:$0xff] }
  0x3a   :  { %799 = vmatpush.xpose.msk.msra.mxu2 %vm128_vm0, %v63_v57 }
  0x3b   :  { %820 = vmatpush.xpose.msk.msra.mxu3 %vm128_vm0, %v79_v58 }
  0x3c   :  { %758 = vmatpush.xpose.msk.msra.mxu0 %vm128_vm0, %v30_v60 }
  0x3d   :  { %779 = vmatpush.xpose.msk.msra.mxu1 %vm128_vm0, %v46_v61 }
  0x3e   :  { %800 = vmatpush.xpose.msk.msra.mxu2 %vm128_vm0, %v62_v62 }
  0x3f   :  { %821 = vmatpush.xpose.msk.msra.mxu3 %vm128_vm0, %v78_v63  ;;  %701 = vperm.xlu2 %844, %v698_v17  }
  0x40   :  { %759 = vmatpush.xpose.msk.msra.mxu0 %vm128_vm0, %v29_v1 }
  0x41   :  { %780 = vmatpush.xpose.msk.msra.mxu1 %vm128_vm0, %v45_v2 }
  0x42   :  { %801 = vmatpush.xpose.msk.msra.mxu2 %vm128_vm0, %v61_v3 }
  0x43   :  { %822 = vmatpush.xpose.msk.msra.mxu3 %vm128_vm0, %v77_v4  ;;  %760 = vmatmul.msk.f32.vlgmr.msra.gmra.mxu0 %vm128_vm0, %v93_v6 }
  0x44   :  { %781 = vmatmul.msk.f32.vlgmr.msra.gmra.mxu1 %vm128_vm0, %v93_v6 }
  0x45   :  { %802 = vmatmul.msk.f32.vlgmr.msra.gmra.mxu2 %vm128_vm0, %v93_v6 }
  0x46   :  { %823 = vmatmul.msk.f32.vlgmr.msra.gmra.mxu3 %vm128_vm0, %v93_v6 }
  0x4b   :  { %761 = vmatmul.msk.f32.gmra.mxu0 %vm128_vm0, %v94_v10 }
  0x4c   :  { %782 = vmatmul.msk.f32.gmra.mxu1 %vm128_vm0, %v94_v10 }
  0x4d   :  { %803 = vmatmul.msk.f32.gmra.mxu2 %vm128_vm0, %v94_v10 }
  0x4e   :  { %824 = vmatmul.msk.f32.gmra.mxu3 %vm128_vm0, %v94_v10 }
  0x53   :  { %762 = vmatmul.msk.f32.gmra.mxu0 %vm128_vm0, %v95_v14 }
  0x54   :  { %783 = vmatmul.msk.f32.gmra.mxu1 %vm128_vm0, %v95_v14 }
  0x55   :  { %804 = vmatmul.msk.f32.gmra.mxu2 %vm128_vm0, %v95_v14 }
  0x56   :  { %825 = vmatmul.msk.f32.gmra.mxu3 %vm128_vm0, %v95_v14 }
  0x5b   :  { %763 = vmatmul.msk.f32.gmra.mxu0 %vm128_vm0, %v96_v16 }
  0x5c   :  { %784 = vmatmul.msk.f32.gmra.mxu1 %vm128_vm0, %v96_v16 }
  0x5d   :  { %805 = vmatmul.msk.f32.gmra.mxu2 %vm128_vm0, %v96_v16 }
  0x5e   :  { %826 = vmatmul.msk.f32.gmra.mxu3 %vm128_vm0, %v96_v16 }
  0x63   :  { %764 = vmatmul.msk.f32.gmra.mxu0 %vm128_vm0, %v97_v18 }
  0x64   :  { %785 = vmatmul.msk.f32.gmra.mxu1 %vm128_vm0, %v97_v18 }
  0x65   :  { %806 = vmatmul.msk.f32.gmra.mxu2 %vm128_vm0, %v97_v18 }
  0x66   :  { %827 = vmatmul.msk.f32.gmra.mxu3 %vm128_vm0, %v97_v18 }
  0x81   :  { %v106_v35 = vpop.permute.xlu2 %105 }
  0x90   :  { %v116_v29 = vpop.permute.xlu1 %115 }
  0x93   :  { %v126_v30 = vpop.permute.xlu0 %125 }
  0x98   :  { %v111_v38 = vpop.permute.xlu1 %110 }
  0x9b   :  { %v121_v45 = vpop.permute.xlu0 %120 }
  0xc0   :  { %v353_v19 = vpop.f32.mrf.mxu0 }
  0xc1   :  { %v385_v20 = vpop.f32.mrf.mxu1  ;;  %v354_v36 = vadd.f32 %v353_v19, %v106_v35 }
  0xc2   :  { %v386_v37 = vadd.f32 %v385_v20, %v106_v35 }
  0xc3   :  { %845 = vtanh.f32 %v354_v36 }
  0xc4   :  { %847 = vtanh.f32 %v386_v37 }
  0xc8   :  { %v1304_v21 = vpop.f32.mrf.mxu2  ;;  %v356_v23 = vpop.f32.mrf.mxu0 }
  0xc9   :  { %v1306_v22 = vpop.f32.mrf.mxu3  ;;  %v388_v24 = vpop.f32.mrf.mxu1  ;;  %v357_v39 = vadd.f32 %v356_v23, %v111_v38  ;;  %v418_v7 = vadd.f32 %v1304_v21, %v106_v35  ;;  %v485_v21 = vld [vmem:[%s1341_s3 + $0x8] sm:$0xff] }
  0xca   :  { %v389_v40 = vadd.f32 %v388_v24, %v111_v38  ;;  %v846_v52 = vpop.eup %845  ;;  %v450_v9 = vadd.f32 %v1306_v22, %v106_v35  ;;  %v486_v22 = vld [vmem:[%s1341_s3 + $0x10] sm:$0xf]  ;;  %v503_v35 = vpop.permute.xlu1 %502  ;;  %s936_s3 = smov [#allocation3]  }
  0xcb   :  { %849 = vtanh.f32 %v357_v39  ;;  %v848_v53 = vpop.eup %847  ;;  %s733_s19 = sshll.u32 %s936_s3, 4  ;;  %s734_s19 = int_to_ptr.vmem [resolvable:$true] %s733_s19 }
  0xcc   :  { %851 = vtanh.f32 %v389_v40 }
  0xd0   :  { %v420_v25 = vpop.f32.mrf.mxu2  ;;  %v359_v27 = vpop.f32.mrf.mxu0 }
  0xd1   :  { %v452_v26 = vpop.f32.mrf.mxu3  ;;  %v391_v28 = vpop.f32.mrf.mxu1  ;;  %v360_v50 = vadd.f32 %v359_v27, %v116_v29  ;;  %v421_v3 = vadd.f32 %v420_v25, %v111_v38 }
  0xd2   :  { %v392_v51 = vadd.f32 %v391_v28, %v116_v29  ;;  %v850_v56 = vpop.eup %849  ;;  %v453_v5 = vadd.f32 %v452_v26, %v111_v38  ;;  %v498_v27 = vpop.permute.xlu0 %497 }
  0xd3   :  { %v852_v60 = vpop.eup %851 }
  0xd8   :  { %v423_v31 = vpop.f32.mrf.mxu2  ;;  %v362_v33 = vpop.f32.mrf.mxu0 }
  0xd9   :  { %v455_v32 = vpop.f32.mrf.mxu3  ;;  %v394_v34 = vpop.f32.mrf.mxu1  ;;  %v363_v48 = vadd.f32 %v362_v33, %v121_v45  ;;  %v424_v63 = vadd.f32 %v423_v31, %v116_v29 }
  0xda   :  { %v395_v49 = vadd.f32 %v394_v34, %v121_v45  ;;  %v456_v1 = vadd.f32 %v455_v32, %v116_v29  ;;  %v493_v29 = vpop.permute.xlu2 %492 }
  0xe0   :  { %v426_v41 = vpop.f32.mrf.mxu2  ;;  %v365_v43 = vpop.f32.mrf.mxu0 }
  0xe1   :  { %v458_v42 = vpop.f32.mrf.mxu3  ;;  %v397_v44 = vpop.f32.mrf.mxu1  ;;  %v366_v46 = vadd.f32 %v365_v43, %v126_v30  ;;  %v427_v57 = vadd.f32 %v426_v41, %v121_v45 }
  0xe2   :  { %v398_v47 = vadd.f32 %v397_v44, %v126_v30  ;;  %v459_v61 = vadd.f32 %v458_v42, %v121_v45 }
  0xe3   :  { %853 = vtanh.f32 %v366_v46 }
  0xe4   :  { %855 = vtanh.f32 %v398_v47  ;;  %v642_v47 = vpop.permute.xlu0 %641 }
  0xe5   :  { %857 = vtanh.f32 %v363_v48 }
  0xe6   :  { %859 = vtanh.f32 %v395_v49 }
  0xe7   :  { %861 = vtanh.f32 %v360_v50 }
  0xe8   :  { %v429_v54 = vpop.f32.mrf.mxu2  ;;  %863 = vtanh.f32 %v392_v51 }
  0xe9   :  { %v461_v55 = vpop.f32.mrf.mxu3  ;;  %v430_v58 = vadd.f32 %v429_v54, %v126_v30  ;;  %v854_v62 = vpop.eup %853 }
  0xea   :  { %v462_v59 = vadd.f32 %v461_v55, %v126_v30  ;;  %v856_v0 = vpop.eup %855  ;;  %526 = vmatpush.msrb.mxu0 %v854_v62  ;;  %v637_v54 = vpop.permute.xlu2 %636 }
  0xeb   :  { %865 = vtanh.f32 %v430_v58  ;;  %v858_v2 = vpop.eup %857  ;;  %552 = vmatpush.msrb.mxu1 %v856_v0 }
  0xec   :  { %867 = vtanh.f32 %v462_v59  ;;  %v860_v4 = vpop.eup %859  ;;  %527 = vmatpush.msrb.mxu0 %v858_v2 }
  0xed   :  { %869 = vtanh.f32 %v427_v57  ;;  %v862_v6 = vpop.eup %861  ;;  %553 = vmatpush.msrb.mxu1 %v860_v4 }
  0xee   :  { %871 = vtanh.f32 %v459_v61  ;;  %v864_v8 = vpop.eup %863  ;;  %528 = vmatpush.msrb.mxu0 %v862_v6 }
  0xef   :  { %873 = vtanh.f32 %v424_v63  ;;  %554 = vmatpush.msrb.mxu1 %v864_v8 }
  0xf0   :  { %875 = vtanh.f32 %v456_v1  ;;  %529 = vmatpush.msrb.mxu0 %v850_v56 }
  0xf1   :  { %v866_v10 = vpop.eup %865  ;;  %877 = vtanh.f32 %v421_v3  ;;  %555 = vmatpush.msrb.mxu1 %v852_v60 }
  0xf2   :  { %v868_v11 = vpop.eup %867  ;;  %879 = vtanh.f32 %v453_v5  ;;  %578 = vmatpush.msrb.mxu2 %v866_v10  ;;  %530 = vmatpush.msrb.mxu0 %v846_v52 }
  0xf3   :  { %v870_v12 = vpop.eup %869  ;;  %881 = vtanh.f32 %v418_v7  ;;  %604 = vmatpush.msrb.mxu3 %v868_v11  ;;  %556 = vmatpush.msrb.mxu1 %v848_v53  ;;  %v647_v53 = vpop.permute.xlu1 %646 }
  0xf4   :  { %v872_v14 = vpop.eup %871  ;;  %883 = vtanh.f32 %v450_v9  ;;  %579 = vmatpush.msrb.mxu2 %v870_v12  ;;  %828 = vmatmul.msk.f32.vlgmr.msrb.gmra.mxu0 %vm505_vm1, %v484_v13 }
  0xf5   :  { %v874_v15 = vpop.eup %873  ;;  %605 = vmatpush.msrb.mxu3 %v872_v14  ;;  %831 = vmatmul.msk.f32.vlgmr.msrb.gmra.mxu1 %vm505_vm1, %v484_v13 }
  0xf6   :  { %v876_v16 = vpop.eup %875  ;;  %580 = vmatpush.msrb.mxu2 %v874_v15 }
  0xf7   :  { %v878_v17 = vpop.eup %877  ;;  %606 = vmatpush.msrb.mxu3 %v876_v16 }
  0xf8   :  { %v880_v18 = vpop.eup %879  ;;  %581 = vmatpush.msrb.mxu2 %v878_v17 }
  0xf9   :  { %v882_v19 = vpop.eup %881  ;;  %607 = vmatpush.msrb.mxu3 %v880_v18 }
  0xfa   :  { %v884_v20 = vpop.eup %883  ;;  %582 = vmatpush.msrb.mxu2 %v882_v19 }
  0xfb   :  { %608 = vmatpush.msrb.mxu3 %v884_v20  ;;  %834 = vmatmul.msk.f32.vlgmr.msrb.gmra.mxu2 %vm505_vm1, %v484_v13 }
  0xfc   :  { %837 = vmatmul.msk.f32.vlgmr.msrb.gmra.mxu3 %vm505_vm1, %v484_v13  ;;  %829 = vmatmul.msk.f32.gmra.mxu0 %vm505_vm1, %v485_v21 }
  0xfd   :  { %832 = vmatmul.msk.f32.gmra.mxu1 %vm505_vm1, %v485_v21 }
 0x103   :  { %835 = vmatmul.msk.f32.gmra.mxu2 %vm505_vm1, %v485_v21 }
 0x104   :  { %838 = vmatmul.msk.f32.gmra.mxu3 %vm505_vm1, %v485_v21  ;;  %830 = vmatmul.msk.f32.gmra.mxu0 %vm505_vm1, %v486_v22 }
 0x105   :  { %833 = vmatmul.msk.f32.gmra.mxu1 %vm505_vm1, %v486_v22 }
 0x10b   :  { %836 = vmatmul.msk.f32.gmra.mxu2 %vm505_vm1, %v486_v22 }
 0x10c   :  { %839 = vmatmul.msk.f32.gmra.mxu3 %vm505_vm1, %v486_v22 }
 0x171   :  { %v532_v23 = vpop.f32.mrf.mxu0 }
 0x172   :  { %v558_v24 = vpop.f32.mrf.mxu1  ;;  %v533_v31 = vadd.f32 %v532_v23, %v493_v29 }
 0x173   :  { %v559_v34 = vadd.f32 %v558_v24, %v493_v29 }
 0x179   :  { %v535_v25 = vpop.f32.mrf.mxu0 }
 0x17a   :  { %v561_v26 = vpop.f32.mrf.mxu1  ;;  %v536_v28 = vadd.f32 %v535_v25, %v498_v27 }
 0x17b   :  { %v562_v30 = vadd.f32 %v561_v26, %v498_v27 }
 0x17c   :  { %885 = vtanh.f32 %v536_v28 }
 0x17d   :  { %887 = vtanh.f32 %v562_v30 }
 0x17e   :  { %v584_v32 = vpop.f32.mrf.mxu2  ;;  %889 = vtanh.f32 %v533_v31 }
 0x17f   :  { %v610_v33 = vpop.f32.mrf.mxu3  ;;  %891 = vtanh.f32 %v559_v34  ;;  %v585_v51 = vadd.f32 %v584_v32, %v493_v29 }
 0x180   :  { %v611_v55 = vadd.f32 %v610_v33, %v493_v29 }
 0x181   :  { %v538_v36 = vpop.f32.mrf.mxu0 }
 0x182   :  { %v564_v37 = vpop.f32.mrf.mxu1  ;;  %v539_v38 = vadd.f32 %v538_v36, %v503_v35  ;;  %v886_v40 = vpop.eup %885 }
 0x183   :  { %v565_v39 = vadd.f32 %v564_v37, %v503_v35  ;;  %v888_v43 = vpop.eup %887  ;;  %v653_v49 = vmul.f32 %v886_v40, %v642_v47 }
 0x184   :  { %893 = vtanh.f32 %v539_v38  ;;  %v890_v44 = vpop.eup %889  ;;  %v654_v50 = vmul.f32 %v888_v43, %v642_v47  ;;  %v702_v38 = vpop.permute.xlu2 %701 }
 0x185   :  { %895 = vtanh.f32 %v565_v39  ;;  %v892_v46 = vpop.eup %891  ;;  %v649_v57 = vmul.f32 %v890_v44, %v637_v54  ;;  %v704_v43 = vperm.slane %v702_v38, 0 }
 0x186   :  { %v587_v41 = vpop.f32.mrf.mxu2  ;;  %v650_v58 = vmul.f32 %v892_v46, %v637_v54 }
 0x187   :  { %v613_v42 = vpop.f32.mrf.mxu3  ;;  %v588_v45 = vadd.f32 %v587_v41, %v498_v27  ;;  %v661_v61 = vadd.f32 %v653_v49, %v649_v57 }
 0x188   :  { %v614_v48 = vadd.f32 %v613_v42, %v498_v27  ;;  %v671_v62 = vadd.f32 %v654_v50, %v650_v58 }
 0x189   :  { %897 = vtanh.f32 %v588_v45 }
 0x18a   :  { %v894_v52 = vpop.eup %893  ;;  %899 = vtanh.f32 %v614_v48 }
 0x18b   :  { %v896_v56 = vpop.eup %895  ;;  %v657_v59 = vmul.f32 %v894_v52, %v647_v53  ;;  %901 = vtanh.f32 %v585_v51 }
 0x18c   :  { %v658_v60 = vmul.f32 %v896_v56, %v647_v53  ;;  %903 = vtanh.f32 %v611_v55 }
 0x18d   :  { %v663_v63 = vsel %vm662_vm2, %v657_v59, 0.0 }
 0x18e   :  { %v590_v0 = vpop.f32.mrf.mxu2  ;;  %v672_v2 = vsel %vm662_vm2, %v658_v60, 0.0  ;;  %v664_v5 = vadd.f32 %v663_v63, %v661_v61 }
 0x18f   :  { %v616_v1 = vpop.f32.mrf.mxu3  ;;  %v591_v3 = vadd.f32 %v590_v0, %v503_v35  ;;  %v673_v6 = vadd.f32 %v672_v2, %v671_v62  ;;  %v898_v7 = vpop.eup %897 }
 0x190   :  { %v617_v4 = vadd.f32 %v616_v1, %v503_v35  ;;  %v900_v9 = vpop.eup %899  ;;  %v665_v11 = vrot.slane %v664_v5, 4  ;;  %v655_v14 = vmul.f32 %v898_v7, %v642_v47 }
 0x191   :  { %905 = vtanh.f32 %v591_v3  ;;  %v674_v8 = vrot.slane %v673_v6, 4  ;;  %v902_v10 = vpop.eup %901  ;;  %v656_v16 = vmul.f32 %v900_v9, %v642_v47 }
 0x192   :  { %907 = vtanh.f32 %v617_v4  ;;  %v904_v13 = vpop.eup %903  ;;  %v651_v18 = vmul.f32 %v902_v10, %v637_v54  ;;  %v666_v21 = vadd.f32 %v665_v11, %v664_v5 }
 0x193   :  { %v675_v12 = vadd.f32 %v674_v8, %v673_v6  ;;  %v652_v20 = vmul.f32 %v904_v13, %v637_v54 }
 0x194   :  { %v680_v23 = vadd.f32 %v655_v14, %v651_v18  ;;  %v667_v30 = vrot.slane %v666_v21, 2 }
 0x195   :  { %v676_v15 = vrot.slane %v675_v12, 2  ;;  %v689_v26 = vadd.f32 %v656_v16, %v652_v20 }
 0x196   :  { %v668_v36 = vadd.f32 %v667_v30, %v666_v21 }
 0x197   :  { %v906_v17 = vpop.eup %905  ;;  %v677_v25 = vadd.f32 %v676_v15, %v675_v12 }
 0x198   :  { %v908_v19 = vpop.eup %907  ;;  %v659_v22 = vmul.f32 %v906_v17, %v647_v53  ;;  %v669_v45 = vrot.slane %v668_v36, 1 }
 0x199   :  { %v660_v24 = vmul.f32 %v908_v19, %v647_v53  ;;  %v678_v34 = vrot.slane %v677_v25, 1  ;;  %v723_v53 = vlaneseq }
 0x19a   :  { %v681_v27 = vsel %vm662_vm2, %v659_v22, 0.0  ;;  %v670_v50 = vadd.f32 %v669_v45, %v668_v36 }
 0x19b   :  { %v682_v28 = vadd.f32 %v681_v27, %v680_v23  ;;  %v690_v29 = vsel %vm662_vm2, %v660_v24, 0.0  ;;  %v679_v41 = vadd.f32 %v678_v34, %v677_v25  ;;  %vm725_vm6 = vcmp.lt.s32.totalorder %v723_v53, 512 }
 0x19c   :  { %v691_v31 = vadd.f32 %v690_v29, %v689_v26  ;;  %v705_v57 = vadd.f32 %v704_v43, %v670_v50 }
 0x19d   :  { %v683_v32 = vrot.slane %v682_v28, 4  ;;  %v706_v48 = vadd.f32 %v704_v43, %v679_v41 }
 0x19e   :  { %v692_v33 = vrot.slane %v691_v31, 4 }
 0x19f   :  { %v684_v35 = vadd.f32 %v683_v32, %v682_v28  ;;  %v713_v55 = vrot.slane %v706_v48, 7 }
 0x1a0   :  { %v693_v37 = vadd.f32 %v692_v33, %v691_v31 }
 0x1a1   :  { %v685_v39 = vrot.slane %v684_v35, 2  ;;  %v717_v59 = vsel %vm716_vm3, %v705_v57, %v713_v55 }
 0x1a2   :  { %v694_v40 = vrot.slane %v693_v37, 2 }
 0x1a3   :  { %v686_v42 = vadd.f32 %v685_v39, %v684_v35 }
 0x1a4   :  { %v695_v44 = vadd.f32 %v694_v40, %v693_v37 }
 0x1a5   :  { %v687_v46 = vrot.slane %v686_v42, 1 }
 0x1a6   :  { %v696_v47 = vrot.slane %v695_v44, 1 }
 0x1a7   :  { %v688_v49 = vadd.f32 %v687_v46, %v686_v42 }
 0x1a8   :  { %v697_v51 = vadd.f32 %v696_v47, %v695_v44 }
 0x1a9   :  { %v707_v52 = vadd.f32 %v704_v43, %v688_v49 }
 0x1aa   :  { %v708_v54 = vadd.f32 %v704_v43, %v697_v51 }
 0x1ab   :  { %v714_v56 = vrot.slane %v707_v52, 6 }
 0x1ac   :  { %v715_v58 = vrot.slane %v708_v54, 5 }
 0x1ae   :  { %v719_v60 = vsel %vm718_vm4, %v714_v56, %v715_v58 }
 0x1af   :  { %v721_v61 = vsel %vm720_vm5, %v717_v59, %v719_v60 }
 0x1b0   :  { %727 = vst.msk [vmem:[#allocation3] sm:$0xf] %vm725_vm6, %v721_v61 }
 0x1b1   :  { %738 = dma.vmem_to_hbm [thread:$0]  %s734_s19, 64, %s736_s21, [#allocation4]  }
 0x1b2   :  { %933 = dma.done.wait [#allocation4], 64  }
 0x1b3   :  { %934 = vsyncadd [#allocation4], 4294967232 }
 0x1b4   :  { %743 = vsyncpa [#allocation4], 1 }

</bundles_post_ra>
